<compile_context>
chip_gen: v7x
topology: tpu7x:2x2x1
jax: 0.10.0
libtpu: 0.0.40
codegen_flags: <defaults>
</compile_context>

<pallas_src>
import jax
import jax.numpy as jnp
from jax.experimental import pallas as pl
from jax.experimental.pallas import tpu as pltpu

HIDDEN = 128


def _round_up(x, m):
    return (x + m - 1) // m * m


def qnet_kernel(x_ref, w1_ref, b1_ref, wc_ref, bc_ref, wo_ref, bo_ref, out_ref):
    # Fused first layer: [state|action] @ blockdiag(Ws, Wa) + [bs|ba], ReLU.
    # bf16 operands, f32 accumulation on the MXU.
    h1 = jnp.dot(x_ref[...], w1_ref[...], preferred_element_type=jnp.float32)
    h1 = jnp.maximum(h1 + b1_ref[...], 0.0)

    # Combined layer: single K=256 matmul (replaces the per-branch split).
    h2 = jnp.dot(h1.astype(jnp.bfloat16), wc_ref[...],
                 preferred_element_type=jnp.float32)
    h2 = jnp.maximum(h2 + bc_ref[...], 0.0)

    # Output layer 128 -> 1 as VPU multiply + XLU lane reduction; scalar bias
    # comes from SMEM.
    q = jnp.sum(h2 * wo_ref[...], axis=-1, keepdims=True) + bo_ref[0]
    out_ref[...] = q.astype(out_ref.dtype)


def qnet_forward(state, action, packed, *, tile_b=1024):
    """Forward pass. `packed` comes from pack_params()."""
    B = state.shape[0]
    x = jnp.concatenate([state, action], axis=1).astype(jnp.bfloat16)
    feat = x.shape[1]

    # Tile the batch; pad B up to a tile multiple so the tail block is in-range.
    tb = min(tile_b, _round_up(B, 16))
    b_pad = _round_up(B, tb)
    if b_pad != B:
        x = jnp.pad(x, ((0, b_pad - B), (0, 0)))
    grid = (b_pad // tb,)

    out = pl.pallas_call(
        qnet_kernel,
        out_shape=jax.ShapeDtypeStruct((b_pad, 1), jnp.float32),
        grid=grid,
        in_specs=[
            pl.BlockSpec((tb, feat), lambda i: (i, 0)),            # x tile
            pl.BlockSpec((feat, 2 * HIDDEN), lambda i: (0, 0)),    # W1 (block-diag)
            pl.BlockSpec((1, 2 * HIDDEN), lambda i: (0, 0)),       # b1
            pl.BlockSpec((2 * HIDDEN, HIDDEN), lambda i: (0, 0)),  # Wc
            pl.BlockSpec((1, HIDDEN), lambda i: (0, 0)),           # bc
            pl.BlockSpec((1, HIDDEN), lambda i: (0, 0)),           # Wo row
            pl.BlockSpec(memory_space=pltpu.MemorySpace.SMEM),     # bo scalar
        ],
        out_specs=pl.BlockSpec((tb, 1), lambda i: (i, 0)),
        compiler_params=pltpu.CompilerParams(
            dimension_semantics=("parallel",)),
    )(x, packed["W1"], packed["b1"], packed["Wc"], packed["bc"],
      packed["Wo_row"], packed["bo"])
    return out[:B]


def init_params(key, state_size, action_size):
    """Deterministic PyTorch-style uniform(-1/sqrt(fan_in), 1/sqrt(fan_in)) init."""
    def linear(k, fan_in, fan_out):
        k1, k2 = jax.random.split(k)
        bound = 1.0 / jnp.sqrt(fan_in)
        W = jax.random.uniform(k1, (fan_in, fan_out), jnp.float32, -bound, bound)
        b = jax.random.uniform(k2, (1, fan_out), jnp.float32, -bound, bound)
        return W, b

    ks = jax.random.split(key, 4)
    Ws, bs = linear(ks[0], state_size, HIDDEN)
    Wa, ba = linear(ks[1], action_size, HIDDEN)
    Wc, bc = linear(ks[2], 2 * HIDDEN, HIDDEN)
    Wo, bo = linear(ks[3], HIDDEN, 1)
    return {"Ws": Ws, "bs": bs, "Wa": Wa, "ba": ba,
            "Wc": Wc, "bc": bc, "Wo": Wo, "bo": bo}


def pack_params(p, state_size, action_size):
    """Pack per-layer params into the fused kernel layout (bf16 matmul weights)."""
    feat = state_size + action_size
    W1 = jnp.zeros((feat, 2 * HIDDEN), jnp.float32)
    W1 = W1.at[:state_size, :HIDDEN].set(p["Ws"])
    W1 = W1.at[state_size:, HIDDEN:].set(p["Wa"])
    return {
        "W1": W1.astype(jnp.bfloat16),                              # (feat, 256)
        "b1": jnp.concatenate([p["bs"], p["ba"]], axis=1),          # (1, 256) f32
        "Wc": p["Wc"].astype(jnp.bfloat16),                         # (256, 128)
        "bc": p["bc"],                                              # (1, 128) f32
        "Wo_row": p["Wo"].T,                                        # (1, 128) f32
        "bo": p["bo"].reshape((1,)),                                # (1,) f32 (SMEM)
    }


def qnet_reference(state, action, p):
    s_out = jnp.maximum(state @ p["Ws"] + p["bs"], 0.0)
    a_out = jnp.maximum(action @ p["Wa"] + p["ba"], 0.0)
    merged = jnp.concatenate([s_out, a_out], axis=1)
    comb = jnp.maximum(merged @ p["Wc"] + p["bc"], 0.0)
    return comb @ p["Wo"] + p["bo"]


if __name__ == "__main__":
    key = jax.random.PRNGKey(0)
    k_param, k_state, k_action, k_state2, k_action2 = jax.random.split(key, 5)

    state_size = 8
    action_size = 4
    params = init_params(k_param, state_size, action_size)
    packed = pack_params(params, state_size, action_size)

    # Small inference-style batch (single grid step, padded to the sublane tile).
    batch = 2
    state = jax.random.normal(k_state, (batch, state_size), jnp.float32)
    action = jax.random.normal(k_action, (batch, action_size), jnp.float32)
    q = qnet_forward(state, action, packed)
    jax.block_until_ready(q)
    q_ref = qnet_reference(state, action, params)
    assert q.shape == (batch, 1)
    assert jnp.allclose(q, q_ref, atol=5e-2, rtol=5e-2), (q, q_ref)

    # Ragged batch exercising the grid (grid=(3,), tile=16) and tail padding.
    batch2 = 37
    state2 = jax.random.normal(k_state2, (batch2, state_size), jnp.float32)
    action2 = jax.random.normal(k_action2, (batch2, action_size), jnp.float32)
    q2 = qnet_forward(state2, action2, packed, tile_b=16)
    jax.block_until_ready(q2)
    q2_ref = qnet_reference(state2, action2, params)
    assert q2.shape == (batch2, 1)
    assert jnp.allclose(q2, q2_ref, atol=5e-2, rtol=5e-2), (q2, q2_ref)

    print("KERNEL_OK")
</pallas_src>

<mosaic_0001>
module attributes {stable_mosaic.version = 11 : i64} {
  func.func @qnet_kernel(%arg0: i32, %arg1: memref<16x12xbf16, #tpu.memory_space<vmem>>, %arg2: memref<12x256xbf16, #tpu.memory_space<vmem>>, %arg3: memref<1x256xf32, #tpu.memory_space<vmem>>, %arg4: memref<256x128xbf16, #tpu.memory_space<vmem>>, %arg5: memref<1x128xf32, #tpu.memory_space<vmem>>, %arg6: memref<1x128xf32, #tpu.memory_space<vmem>>, %arg7: memref<1xf32, #tpu.memory_space<smem>>, %arg8: memref<16x1xf32, #tpu.memory_space<vmem>>) attributes {dimension_semantics = [#tpu.dimension_semantics<parallel>], iteration_bounds = array<i64: 1>, scalar_prefetch = 0 : i64, scratch_operands = 0 : i64, tpu.core_type = #tpu.core_type<tc>, window_params = [{transform_indices = @transform_0, window_bounds = array<i64: 16, 12>}, {pipeline_mode = #tpu.pipeline_mode<synchronous>, transform_indices = @transform_1, window_bounds = array<i64: 12, 256>}, {pipeline_mode = #tpu.pipeline_mode<synchronous>, transform_indices = @transform_2, window_bounds = array<i64: 1, 256>}, {pipeline_mode = #tpu.pipeline_mode<synchronous>, transform_indices = @transform_3, window_bounds = array<i64: 256, 128>}, {pipeline_mode = #tpu.pipeline_mode<synchronous>, transform_indices = @transform_4, window_bounds = array<i64: 1, 128>}, {pipeline_mode = #tpu.pipeline_mode<synchronous>, transform_indices = @transform_5, window_bounds = array<i64: 1, 128>}, {transform_indices = @transform_6, window_bounds = array<i64: 1>}, {transform_indices = @transform_7, window_bounds = array<i64: 16, 1>}]} {
    %c0 = arith.constant 0 : index
    %c0_0 = arith.constant 0 : index
    %0 = vector.load %arg1[%c0, %c0_0] : memref<16x12xbf16, #tpu.memory_space<vmem>>, vector<16x12xbf16>
    %c0_1 = arith.constant 0 : index
    %c0_2 = arith.constant 0 : index
    %1 = vector.load %arg2[%c0_1, %c0_2] : memref<12x256xbf16, #tpu.memory_space<vmem>>, vector<12x256xbf16>
    %cst = arith.constant dense<0.000000e+00> : vector<16x256xf32>
    %2 = tpu.matmul %0, %1, %cst {dimension_numbers = #tpu.dot_dimension_numbers<[1], [0], [0], [1], [0, 0, 1, 1], [], []>} : vector<16x12xbf16>, vector<12x256xbf16>, vector<16x256xf32> -> vector<16x256xf32>
    %c0_3 = arith.constant 0 : index
    %c0_4 = arith.constant 0 : index
    %3 = vector.load %arg3[%c0_3, %c0_4] : memref<1x256xf32, #tpu.memory_space<vmem>>, vector<1x256xf32>
    %4 = vector.broadcast %3 : vector<1x256xf32> to vector<16x256xf32>
    %5 = arith.addf %2, %4 : vector<16x256xf32>
    %cst_5 = arith.constant 0.000000e+00 : f32
    %6 = vector.broadcast %cst_5 : f32 to vector<16x256xf32>
    %7 = arith.maximumf %5, %6 : vector<16x256xf32>
    %8 = arith.truncf %7 : vector<16x256xf32> to vector<16x256xbf16>
    %c0_6 = arith.constant 0 : index
    %c0_7 = arith.constant 0 : index
    %9 = vector.load %arg4[%c0_6, %c0_7] : memref<256x128xbf16, #tpu.memory_space<vmem>>, vector<256x128xbf16>
    %cst_8 = arith.constant dense<0.000000e+00> : vector<16x128xf32>
    %10 = tpu.matmul %8, %9, %cst_8 {dimension_numbers = #tpu.dot_dimension_numbers<[1], [0], [0], [1], [0, 0, 1, 1], [], []>} : vector<16x256xbf16>, vector<256x128xbf16>, vector<16x128xf32> -> vector<16x128xf32>
    %c0_9 = arith.constant 0 : index
    %c0_10 = arith.constant 0 : index
    %11 = vector.load %arg5[%c0_9, %c0_10] : memref<1x128xf32, #tpu.memory_space<vmem>>, vector<1x128xf32>
    %12 = vector.broadcast %11 : vector<1x128xf32> to vector<16x128xf32>
    %13 = arith.addf %10, %12 : vector<16x128xf32>
    %cst_11 = arith.constant 0.000000e+00 : f32
    %14 = vector.broadcast %cst_11 : f32 to vector<16x128xf32>
    %15 = arith.maximumf %13, %14 : vector<16x128xf32>
    %c0_12 = arith.constant 0 : index
    %c0_13 = arith.constant 0 : index
    %16 = vector.load %arg6[%c0_12, %c0_13] : memref<1x128xf32, #tpu.memory_space<vmem>>, vector<1x128xf32>
    %17 = vector.broadcast %16 : vector<1x128xf32> to vector<16x128xf32>
    %18 = arith.mulf %15, %17 : vector<16x128xf32>
    %cst_14 = arith.constant dense<0.000000e+00> : vector<16xf32>
    %19 = vector.multi_reduction <add>, %18, %cst_14 [1] : vector<16x128xf32> to vector<16xf32>
    %20 = vector.shape_cast %19 : vector<16xf32> to vector<16x1xf32>
    %c0_15 = arith.constant 0 : index
    %21 = memref.load %arg7[%c0_15] : memref<1xf32, #tpu.memory_space<smem>>
    %22 = vector.broadcast %21 : f32 to vector<16x1xf32>
    %23 = arith.addf %20, %22 : vector<16x1xf32>
    %c0_16 = arith.constant 0 : index
    %c0_17 = arith.constant 0 : index
    %24 = vector.load %arg8[%c0_16, %c0_17] : memref<16x1xf32, #tpu.memory_space<vmem>>, vector<16x1xf32>
    tpu.vector_store %arg8[%c0_16, %c0_17], %23 {strides = array<i32>} : memref<16x1xf32, #tpu.memory_space<vmem>>, vector<16x1xf32>,
    return
  }
  func.func @transform_0(%arg0: i32) -> (i32, i32) {
    %c0_i32 = arith.constant 0 : i32
    %c0_i32_0 = arith.constant 0 : i32
    return %arg0, %c0_i32 : i32, i32
  }
  func.func @transform_1(%arg0: i32) -> (i32, i32) {
    %c0_i32 = arith.constant 0 : i32
    %c0_i32_0 = arith.constant 0 : i32
    %c0_i32_1 = arith.constant 0 : i32
    return %c0_i32, %c0_i32_0 : i32, i32
  }
  func.func @transform_2(%arg0: i32) -> (i32, i32) {
    %c0_i32 = arith.constant 0 : i32
    %c0_i32_0 = arith.constant 0 : i32
    %c0_i32_1 = arith.constant 0 : i32
    return %c0_i32, %c0_i32_0 : i32, i32
  }
  func.func @transform_3(%arg0: i32) -> (i32, i32) {
    %c0_i32 = arith.constant 0 : i32
    %c0_i32_0 = arith.constant 0 : i32
    %c0_i32_1 = arith.constant 0 : i32
    return %c0_i32, %c0_i32_0 : i32, i32
  }
  func.func @transform_4(%arg0: i32) -> (i32, i32) {
    %c0_i32 = arith.constant 0 : i32
    %c0_i32_0 = arith.constant 0 : i32
    %c0_i32_1 = arith.constant 0 : i32
    return %c0_i32, %c0_i32_0 : i32, i32
  }
  func.func @transform_5(%arg0: i32) -> (i32, i32) {
    %c0_i32 = arith.constant 0 : i32
    %c0_i32_0 = arith.constant 0 : i32
    %c0_i32_1 = arith.constant 0 : i32
    return %c0_i32, %c0_i32_0 : i32, i32
  }
  func.func @transform_6(%arg0: i32) -> i32 {
    %c0_i32 = arith.constant 0 : i32
    %c0_i32_0 = arith.constant 0 : i32
    return %c0_i32 : i32
  }
  func.func @transform_7(%arg0: i32) -> (i32, i32) {
    %c0_i32 = arith.constant 0 : i32
    %c0_i32_0 = arith.constant 0 : i32
    return %arg0, %c0_i32 : i32, i32
  }
}

</mosaic_0001>

<bundles_post_ra>
// kernel: tpu_custom_call.1
= control target key start
LH: loop header
LB: loop body
LE: loop exit
PB: predicated region body
PF: predicated region fallthrough
CT: control target
= control target key end

     0   :  { %13 = vsyncpa [#allocation4], 0  ;;  %s607_s0 = inlined_call_operand.hbm [shape: bf16[16,12], index: 0, kind: input, shape index: {}]   ;;  %s608_s1 = inlined_call_operand.hbm [shape: bf16[12,256], index: 1, kind: input, shape index: {}]   ;;  %s609_s2 = inlined_call_operand.vmem [shape: f32[1,256], index: 2, kind: input, shape index: {}]   ;;  %s610_s3 = inlined_call_operand.hbm [shape: bf16[256,128], index: 3, kind: input, shape index: {}]   ;;  %s611_s4 = inlined_call_operand.vmem [shape: f32[1,128], index: 4, kind: input, shape index: {}]   ;;  %s612_s5 = inlined_call_operand.vmem [shape: f32[1,128], index: 5, kind: input, shape index: {}]   ;;  %s613_s6 = inlined_call_operand.<no memory space> [shape: f32[1], index: 6, kind: input, shape index: {}]   ;;  %s614_s7 = inlined_call_operand.vmem [shape: f32[16,1], index: 7, kind: output, shape index: {}]  }
   0x1   :  { %14 = vsyncpa [#allocation6], 0  ;;  %s505_s24 = smov [#allocation5]   ;;  %s435_s28 = scalar_lea.hbm %s608_s1, 256 }
   0x2   :  { %s32_s25 = sshll.u32 %s505_s24, 4  ;;  %p436_p0 = scmp.ne.s32.totalorder %s608_s1, %s435_s28  ;;  %s33_s25 = int_to_ptr.vmem [resolvable:$true] %s32_s25 }
   0x3   :  { %p439_p1 = scmp.lt.u32.totalorder %s435_s28, %s608_s1 }
   0x5   :  { %p441_p2 = pnand %p439_p1, %p436_p0 }
   0x7   :  { %444 = shalt.err (!%p441_p2)
}
   0x8   :  { %s445_s10 = scalar_lea.vmem %s33_s25, 256  ;;  %p450_p4 = scmp.lt.s32.totalorder %s33_s25, %s33_s25 }
   0x9   :  { %p446_p3 = scmp.ne.s32.totalorder %s33_s25, %s445_s10  ;;  %p451_p5 = scmp.lt.s32.totalorder %s445_s10, %s445_s10 }
   0xb   :  { %p452_p6 = por %p451_p5, %p450_p4 }
   0xd   :  { %p453_p7 = pnand %p452_p6, %p446_p3 }
   0xf   :  { %456 = shalt.err (!%p453_p7)
}
  0x10   :  { %s506_s11 = smov 128   ;;  %s507_s12 = smov 8  }
  0x11   :  { %38 = dma.hbm_to_vmem [thread:$0]  %s608_s1, 256, %s33_s25, [#allocation6], %s506_s11, %s506_s11, %s507_s12  }
  0x12   :  { %s508_s15 = smov [#allocation3]   ;;  %s457_s19 = scalar_lea.hbm %s607_s0, 128 }
  0x13   :  { %s20_s16 = sshll.u32 %s508_s15, 4  ;;  %p458_p8 = scmp.ne.s32.totalorder %s607_s0, %s457_s19  ;;  %s21_s16 = int_to_ptr.vmem [resolvable:$true] %s20_s16 }
  0x14   :  { %p461_p9 = scmp.lt.u32.totalorder %s457_s19, %s607_s0 }
  0x16   :  { %p463_p10 = pnand %p461_p9, %p458_p8 }
  0x18   :  { %466 = shalt.err (!%p463_p10)
}
  0x19   :  { %s467_s24 = scalar_lea.vmem %s21_s16, 128  ;;  %p472_p12 = scmp.lt.s32.totalorder %s21_s16, %s21_s16 }
  0x1a   :  { %p468_p11 = scmp.ne.s32.totalorder %s21_s16, %s467_s24  ;;  %p473_p13 = scmp.lt.s32.totalorder %s467_s24, %s467_s24 }
  0x1c   :  { %p474_p0 = por %p473_p13, %p472_p12 }
  0x1e   :  { %p475_p1 = pnand %p474_p0, %p468_p11 }
  0x20   :  { %478 = shalt.err (!%p475_p1)
}
  0x21   :  { %s509_s1 = smov 64   ;;  %s510_s25 = smov 4  }
  0x22   :  { %26 = dma.hbm_to_vmem [thread:$0]  %s607_s0, 128, %s21_s16, [#allocation4], %s509_s1, %s509_s1, %s510_s25  }
  0x23   :  { %s511_s28 = smov [#allocation7]   ;;  %s479_s9 = scalar_lea.hbm %s610_s3, 2048 }
  0x24   :  { %s46_s29 = sshll.u32 %s511_s28, 4  ;;  %p480_p2 = scmp.ne.s32.totalorder %s610_s3, %s479_s9  ;;  %s47_s29 = int_to_ptr.vmem [resolvable:$true] %s46_s29 }
  0x25   :  { %p483_p3 = scmp.lt.u32.totalorder %s479_s9, %s610_s3 }
  0x27   :  { %p485_p4 = pnand %p483_p3, %p480_p2 }
  0x29   :  { %488 = shalt.err (!%p485_p4)
}
  0x2a   :  { %s489_s14 = scalar_lea.vmem %s47_s29, 2048  ;;  %p494_p6 = scmp.lt.s32.totalorder %s47_s29, %s47_s29 }
  0x2b   :  { %p490_p5 = scmp.ne.s32.totalorder %s47_s29, %s489_s14  ;;  %p495_p7 = scmp.lt.s32.totalorder %s489_s14, %s489_s14 }
  0x2d   :  { %p496_p8 = por %p495_p7, %p494_p6 }
  0x2f   :  { %p497_p9 = pnand %p496_p8, %p490_p5 }
  0x31   :  { %500 = shalt.err (!%p497_p9)
}
  0x32   :  { %52 = dma.hbm_to_vmem [thread:$0]  %s610_s3, 2048, %s47_s29, [#allocation6], %s509_s1, %s509_s1, %s510_s25  }
  0x33   :  { %501 = dma.done.wait [#allocation4], 128  }
  0x34   :  { %502 = vsyncadd [#allocation4], 4294967168 }
  0x35   :  { %503 = dma.done.wait [#allocation6], 2304  }
  0x36   :  { %504 = vsyncadd [#allocation6], 4294964992  ;;  %v512_v0 = vmov 0   ;;  %vm102_vm0 = vcmask 1045504   ;;  %v418_v3 = vld [vmem:[#allocation3] sm:$0xff]   ;;  %v419_v5 = vld [vmem:[#allocation7 + $0x40] sm:$0xff]   ;;  %v75_v21 = vlaneseq  ;;  %v350_v56 = vstv %s613_s6 }
  0x37   :  { %141 = vmatprep.mubr.bf16.mxu0 %v512_v0  ;;  %v415_v1 = vld [vmem:[#allocation5 + $0x4] ss:$8 sps:$4 sm:$0x3f]   ;;  %v417_v2 = vld [vmem:[#allocation5] ss:$8 sps:$4 sm:$0x3f]   ;;  %385 = vmatprep.subr.bf16.mxu1 %v419_v5 }
  0x38   :  { %365 = vmatprep.subr.msk.bf16.mxu0 %vm102_vm0, %v415_v1  ;;  %v104_v4 = vsel %vm102_vm0, %v417_v2, 0  ;;  %vm98_vm1 = vcmask 97280   ;;  %v420_v6 = vld [vmem:[#allocation7] sm:$0xff]   ;;  %v421_v7 = vld [vmem:[#allocation7 + $0x48] sm:$0xff]   ;;  %v423_v9 = vld [vmem:[#allocation7 + $0x50] sm:$0xff]   ;;  %v76_v22 = vshrl.u32 %v75_v21, 7 }
  0x39   :  { %110 = vmatpush1.bf16.msra.mxu0 %v104_v4  ;;  %386 = vmatpush3.bf16.msra.mxu1 %v420_v6  ;;  %v422_v8 = vld [vmem:[#allocation7 + $0x8] sm:$0xff]   ;;  %v424_v10 = vld [vmem:[#allocation7 + $0x10] sm:$0xff]   ;;  %v425_v11 = vld [vmem:[#allocation7 + $0x58] sm:$0xff]   ;;  %vm353_vm2 = vcmask 7168  }
  0x3a   :  { %387 = vmatprep.subr.bf16.mxu1 %v421_v7  ;;  %v426_v12 = vld [vmem:[#allocation7 + $0x18] sm:$0xff]   ;;  %v427_v13 = vld [vmem:[#allocation7 + $0x60] sm:$0xff]   ;;  %v429_v15 = vld [vmem:[#allocation7 + $0x68] sm:$0xff]   ;;  %v77_v23 = vsub.s32 0, %v76_v22  ;;  %v81_v25 = vsub.s32 1, %v76_v22 }
  0x3b   :  { %v428_v14 = vld [vmem:[#allocation7 + $0x20] sm:$0xff]   ;;  %v430_v16 = vld [vmem:[#allocation7 + $0x28] sm:$0xff]   ;;  %v431_v17 = vld [vmem:[#allocation7 + $0x70] sm:$0xff]  }
  0x3c   :  { %366 = vmatmul.mubr.msk.bf16.vlgmr.msra.gmra.mrb[0].mxu0 %vm98_vm1, %v418_v3  ;;  %v432_v18 = vld [vmem:[#allocation7 + $0x30] sm:$0xff]   ;;  %v433_v19 = vld [vmem:[#allocation7 + $0x78] sm:$0xff]   ;;  %v73_v24 = vld [vmem:[%s609_s2] sm:$0x3] }
  0x3d   :  { %388 = vmatpush3.bf16.msra.mxu1 %v422_v8  ;;  %v434_v20 = vld [vmem:[#allocation7 + $0x38] sm:$0xff]   ;;  %v78_v26 = vrot.slane %v73_v24, %v77_v23  ;;  %v82_v27 = vrot.slane %v73_v24, %v81_v25  ;;  %v367_v44 = vld [vmem:[%s611_s4] ss:$0 sm:$0xff] }
  0x3e   :  { %389 = vmatprep.subr.bf16.mxu1 %v423_v9  ;;  %v384_v50 = vld [vmem:[%s612_s5] ss:$0 sm:$0xff] }
  0x41   :  { %390 = vmatpush3.bf16.msra.mxu1 %v424_v10 }
  0x42   :  { %391 = vmatprep.subr.bf16.mxu1 %v425_v11 }
  0x45   :  { %392 = vmatpush3.bf16.msra.mxu1 %v426_v12 }
  0x46   :  { %393 = vmatprep.subr.bf16.mxu1 %v427_v13 }
  0x49   :  { %394 = vmatpush3.bf16.msra.mxu1 %v428_v14 }
  0x4a   :  { %395 = vmatprep.subr.bf16.mxu1 %v429_v15 }
  0x4d   :  { %396 = vmatpush3.bf16.msra.mxu1 %v430_v16 }
  0x4e   :  { %397 = vmatprep.subr.bf16.mxu1 %v431_v17 }
  0x51   :  { %398 = vmatpush3.bf16.msra.mxu1 %v432_v18 }
  0x52   :  { %399 = vmatprep.subr.bf16.mxu1 %v433_v19 }
  0x55   :  { %400 = vmatpush3.bf16.msra.mxu1 %v434_v20 }
 0x10f   :  { %v143_v28 = vpop.f32.mrb[0].mxu0 }
 0x110   :  { %v144_v29 = vadd.f32 %v143_v28, %v78_v26  ;;  %v145_v30 = vpop.f32.mrb[1].mxu0 }
 0x111   :  { %v146_v31 = vadd.f32 %v145_v30, %v82_v27  ;;  %v147_v32 = vpop.f32.mrb[2].mxu0 }
 0x112   :  { %v148_v33 = vadd.f32 %v147_v32, %v78_v26  ;;  %v149_v34 = vpop.f32.mrb[3].mxu0  ;;  %v152_v36 = vmax.f32 %v144_v29, 0.0 }
 0x113   :  { %v150_v35 = vadd.f32 %v149_v34, %v82_v27  ;;  %v153_v38 = vmax.f32 %v146_v31, 0.0 }
 0x114   :  { %v154_v37 = vmax.f32 %v148_v33, 0.0 }
 0x115   :  { %v155_v39 = vmax.f32 %v150_v35, 0.0 }
 0x116   :  { %v156_v40 = vpack.c.bf16 %v154_v37, %v152_v36 }
 0x117   :  { %v157_v41 = vpack.c.bf16 %v155_v39, %v153_v38 }
 0x119   :  { %325 = vmatprep.mubr.bf16.mxu1 %v157_v41 }
 0x11a   :  { %326 = vmatmul.mubr.bf16.vlgmr.msra.gmra.mrb[0].mxu1 %v156_v40 }
 0x1ed   :  { %v401_v42 = vpop.f32.mrb[0].mxu1 }
 0x1ee   :  { %v402_v43 = vpop.f32.mrb[1].mxu1 }
 0x1ef   :  { %v403_v45 = vadd.f32 %v402_v43, %v401_v42  ;;  %v404_v46 = vpop.f32.mrb[2].mxu1 }
 0x1f0   :  { %v405_v47 = vpop.f32.mrb[3].mxu1 }
 0x1f1   :  { %v406_v48 = vadd.f32 %v405_v47, %v404_v46  ;;  %v328_v49 = vadd.f32 %v403_v45, %v367_v44 }
 0x1f3   :  { %v331_v51 = vadd.f32 %v406_v48, %v367_v44  ;;  %v334_v52 = vmax.f32 %v328_v49, 0.0 }
 0x1f5   :  { %v335_v53 = vmax.f32 %v331_v51, 0.0  ;;  %v343_v54 = vmul.f32 %v384_v50, %v334_v52 }
 0x1f7   :  { %345 = vadd.xlane.f32.xlu0 %v343_v54  ;;  %v344_v55 = vmul.f32 %v384_v50, %v335_v53 }
 0x1fb   :  { %347 = vadd.xlane.f32.xlu0 %v344_v55 }
 0x284   :  { %v346_v57 = vpop.xlane.xlu0 %345 }
 0x285   :  { %v351_v58 = vadd.f32 %v350_v56, %v346_v57 }
 0x287   :  { %354 = vst.msk [vmem:[%s614_s7] sm:$0xff] %vm353_vm2, %v351_v58 }
 0x288   :  { %v348_v59 = vpop.xlane.xlu0 %347 }
 0x289   :  { %v352_v60 = vadd.f32 %v350_v56, %v348_v59 }
 0x28b   :  { %355 = vst.msk [vmem:[%s614_s7 + $0x8] sm:$0xff] %vm353_vm2, %v352_v60 }
 0x28c   :  { %360 = vsyncpa [#allocation4], 1 }
 0x28d   :  { %361 = vsyncpa [#allocation6], 1 }

</bundles_post_ra>
